<compile_context>
chip_gen: v6e
topology: v6e:2x2x1
jax: 0.10.0
libtpu: 0.0.40
codegen_flags: <defaults>
</compile_context>

<pallas_src>
import functools

import jax
import jax.numpy as jnp
import numpy as np
from jax.experimental import pallas as pl
from jax.experimental.pallas import tpu as pltpu


def make_freq_bands(n_freqs: int, log_space: bool) -> tuple:
    """Frequency bands matching the PyTorch module (log or linear spacing)."""
    if log_space:
        bands = 2.0 ** np.linspace(0.0, n_freqs - 1, n_freqs)
    else:
        bands = np.linspace(2.0 ** 0.0, 2.0 ** (n_freqs - 1), n_freqs)
    return tuple(float(f) for f in bands)


def _posenc_kernel(x_ref, o_ref, *, freqs, d_input):
    """One tile.

    x_ref: (d_input, tile_n)  lane-dense input block (points on lanes).
    o_ref: (d_output, tile_n) channel-major output block, row order
           [x, sin(x*f0), cos(x*f0), ..., cos(x*f_{K-1})].
    """
    x = x_ref[...]                                        # (d_input, tile_n)
    o_ref[pl.ds(0, d_input), :] = x.astype(o_ref.dtype)   # identity rows

    if not freqs:
        return

    # Stack every frequency along the sublane axis: the scalar muls on the small
    # (d_input, tile_n) pieces are negligible; the expensive sin/cos polynomial
    # sequences then run once over a ~94%-occupied (K*d_input, tile_n) slab.
    phases = jnp.concatenate([x * f for f in freqs], axis=0)   # (K*d_input, tile_n)
    s = jnp.sin(phases)
    c = jnp.cos(phases)

    for k in range(len(freqs)):                            # static unroll, K is small
        lo = k * d_input
        o_ref[pl.ds((1 + 2 * k) * d_input, d_input), :] = (
            s[lo:lo + d_input, :].astype(o_ref.dtype))
        o_ref[pl.ds((2 + 2 * k) * d_input, d_input), :] = (
            c[lo:lo + d_input, :].astype(o_ref.dtype))


def positional_encoder(x: jax.Array,
                       n_freqs: int = 5,
                       log_space: bool = False,
                       tile_n: int = 16384,
                       out_dtype=None,
                       channel_major: bool = False) -> jax.Array:
    """Pallas implementation of PositionalEncoder.forward.

    x: [..., d_input] float array.
    Returns [..., d_input * (1 + 2*n_freqs)] ordered exactly like the PyTorch concat
    ([x, sin(x*f0), cos(x*f0), ...]), or the channel-major (d_output, N) slab when
    `channel_major=True` (no output transpose at all; N = prod of leading dims).
    """
    *lead, d_input = x.shape
    d_output = d_input * (1 + 2 * n_freqs)
    freqs = make_freq_bands(n_freqs, log_space)
    out_dtype = jnp.dtype(x.dtype) if out_dtype is None else jnp.dtype(out_dtype)

    x_flat = x.reshape(-1, d_input)
    n = x_flat.shape[0]

    # Layout plumbing: channels on sublanes, points on lanes (small: d_input/d_output
    # of the traffic).
    x_t = x_flat.T                                        # (d_input, n)

    # tile_n: multiple of 128 lanes; cap so the grid has >= 2 steps whenever n allows
    # it (keeps both v7x TensorCores busy under dimension_semantics=("parallel",)).
    tile_n = max(128, (tile_n // 128) * 128)
    cap = max(128, pl.cdiv(pl.cdiv(n, 2), 128) * 128)
    tile_n = min(tile_n, cap)
    grid = (pl.cdiv(n, tile_n),)

    cost = pl.CostEstimate(
        flops=n * d_input * n_freqs,                      # the x*f multiplies
        transcendentals=2 * n_freqs * d_input * n,        # advisory only (VPU, not EUP)
        bytes_accessed=n * (d_input * jnp.dtype(x.dtype).itemsize
                            + d_output * out_dtype.itemsize),
    )

    kernel = functools.partial(_posenc_kernel, freqs=freqs, d_input=d_input)

    out_t = pl.pallas_call(
        kernel,
        out_shape=jax.ShapeDtypeStruct((d_output, n), out_dtype),
        grid_spec=pltpu.PrefetchScalarGridSpec(
            num_scalar_prefetch=0,
            grid=grid,
            in_specs=[pl.BlockSpec((d_input, tile_n), lambda i: (0, i))],
            out_specs=pl.BlockSpec((d_output, tile_n), lambda i: (0, i)),
        ),
        compiler_params=pltpu.CompilerParams(
            dimension_semantics=("parallel",)),
        cost_estimate=cost,
    )(x_t)

    if channel_major:
        return out_t                                      # (d_output, n), zero extra HBM passes
    return out_t.T.reshape(*lead, d_output)


def positional_encoder_ref(x, n_freqs=5, log_space=False):
    """Pure-JAX reference matching the PyTorch module semantics."""
    freqs = make_freq_bands(n_freqs, log_space)
    pieces = [x]
    for f in freqs:
        pieces.append(jnp.sin(x * f))
        pieces.append(jnp.cos(x * f))
    return jnp.concatenate(pieces, axis=-1)


if __name__ == "__main__":
    key = jax.random.PRNGKey(0)
    k1, k2 = jax.random.split(key)
    d_input = 3
    n_freqs = 5
    d_out = d_input * (1 + 2 * n_freqs)

    # Case 1: linear frequency spacing, N a multiple of 128 (single grid step).
    x1 = jax.random.normal(k1, (2, 64, d_input), dtype=jnp.float32)
    out1 = jax.block_until_ready(
        positional_encoder(x1, n_freqs=n_freqs, log_space=False))
    assert out1.shape == (2, 64, d_out), (out1.shape, (2, 64, d_out))
    ref1 = positional_encoder_ref(x1, n_freqs=n_freqs, log_space=False)
    np.testing.assert_allclose(np.asarray(out1), np.asarray(ref1),
                               rtol=1e-6, atol=1e-6)

    # Case 2: log spacing + ragged N (>=2 grid steps; exercises boundary-tile masking).
    x2 = jax.random.normal(k2, (5, 37, d_input), dtype=jnp.float32)
    out2 = jax.block_until_ready(
        positional_encoder(x2, n_freqs=n_freqs, log_space=True))
    assert out2.shape == (5, 37, d_out), (out2.shape, (5, 37, d_out))
    ref2 = positional_encoder_ref(x2, n_freqs=n_freqs, log_space=True)
    np.testing.assert_allclose(np.asarray(out2), np.asarray(ref2),
                               rtol=1e-6, atol=1e-6)

    # Case 3: channel-major output path (no output transpose) + bf16 output stream.
    out3 = jax.block_until_ready(
        positional_encoder(x1, n_freqs=n_freqs, log_space=False,
                           out_dtype=jnp.bfloat16, channel_major=True))
    assert out3.shape == (d_out, 2 * 64), out3.shape
    ref3 = np.asarray(ref1).reshape(-1, d_out).T
    np.testing.assert_allclose(np.asarray(out3).astype(np.float32), ref3,
                               rtol=2e-2, atol=2e-2)

    print("KERNEL_OK")
</pallas_src>

<mosaic_0001>
module attributes {stable_mosaic.version = 11 : i64} {
  func.func @_posenc_kernel(%arg0: i32, %arg1: memref<3x128xf32, #tpu.memory_space<vmem>>, %arg2: memref<33x128xf32, #tpu.memory_space<vmem>>) attributes {dimension_semantics = [#tpu.dimension_semantics<parallel>], iteration_bounds = array<i64: 1>, scalar_prefetch = 0 : i64, scratch_operands = 0 : i64, tpu.core_type = #tpu.core_type<tc>, window_params = [{transform_indices = @transform_0, window_bounds = array<i64: 3, 128>}, {transform_indices = @transform_1, window_bounds = array<i64: 33, 128>}]} {
    %c0 = arith.constant 0 : index
    %c0_0 = arith.constant 0 : index
    %0 = vector.load %arg1[%c0, %c0_0] : memref<3x128xf32, #tpu.memory_space<vmem>>, vector<3x128xf32>
    %c0_1 = arith.constant 0 : index
    %c0_2 = arith.constant 0 : index
    %1 = vector.load %arg2[%c0_1, %c0_2] : memref<33x128xf32, #tpu.memory_space<vmem>>, vector<3x128xf32>
    tpu.vector_store %arg2[%c0_1, %c0_2], %0 {strides = array<i32>} : memref<33x128xf32, #tpu.memory_space<vmem>>, vector<3x128xf32>,
    %cst = arith.constant 1.000000e+00 : f32
    %2 = vector.broadcast %cst : f32 to vector<3x128xf32>
    %3 = arith.mulf %0, %2 : vector<3x128xf32>
    %cst_3 = arith.constant 4.750000e+00 : f32
    %4 = vector.broadcast %cst_3 : f32 to vector<3x128xf32>
    %5 = arith.mulf %0, %4 : vector<3x128xf32>
    %cst_4 = arith.constant 8.500000e+00 : f32
    %6 = vector.broadcast %cst_4 : f32 to vector<3x128xf32>
    %7 = arith.mulf %0, %6 : vector<3x128xf32>
    %cst_5 = arith.constant 1.225000e+01 : f32
    %8 = vector.broadcast %cst_5 : f32 to vector<3x128xf32>
    %9 = arith.mulf %0, %8 : vector<3x128xf32>
    %cst_6 = arith.constant 1.600000e+01 : f32
    %10 = vector.broadcast %cst_6 : f32 to vector<3x128xf32>
    %11 = arith.mulf %0, %10 : vector<3x128xf32>
    %12 = tpu.concatenate %3, %5, %7, %9, %11 in 0 : vector<3x128xf32>, vector<3x128xf32>, vector<3x128xf32>, vector<3x128xf32>, vector<3x128xf32> -> vector<15x128xf32>
    %13 = math.sin %12 : vector<15x128xf32>
    %14 = math.cos %12 : vector<15x128xf32>
    %15 = vector.extract_strided_slice %13 {offsets = [0, 0], sizes = [3, 128], strides = [1, 1]} : vector<15x128xf32> to vector<3x128xf32>
    %c3 = arith.constant 3 : index
    %c0_7 = arith.constant 0 : index
    %16 = vector.load %arg2[%c3, %c0_7] : memref<33x128xf32, #tpu.memory_space<vmem>>, vector<3x128xf32>
    tpu.vector_store %arg2[%c3, %c0_7], %15 {strides = array<i32>} : memref<33x128xf32, #tpu.memory_space<vmem>>, vector<3x128xf32>,
    %17 = vector.extract_strided_slice %14 {offsets = [0, 0], sizes = [3, 128], strides = [1, 1]} : vector<15x128xf32> to vector<3x128xf32>
    %c6 = arith.constant 6 : index
    %c0_8 = arith.constant 0 : index
    %18 = vector.load %arg2[%c6, %c0_8] : memref<33x128xf32, #tpu.memory_space<vmem>>, vector<3x128xf32>
    tpu.vector_store %arg2[%c6, %c0_8], %17 {strides = array<i32>} : memref<33x128xf32, #tpu.memory_space<vmem>>, vector<3x128xf32>,
    %19 = vector.extract_strided_slice %13 {offsets = [3, 0], sizes = [3, 128], strides = [1, 1]} : vector<15x128xf32> to vector<3x128xf32>
    %c9 = arith.constant 9 : index
    %c0_9 = arith.constant 0 : index
    %20 = vector.load %arg2[%c9, %c0_9] : memref<33x128xf32, #tpu.memory_space<vmem>>, vector<3x128xf32>
    tpu.vector_store %arg2[%c9, %c0_9], %19 {strides = array<i32>} : memref<33x128xf32, #tpu.memory_space<vmem>>, vector<3x128xf32>,
    %21 = vector.extract_strided_slice %14 {offsets = [3, 0], sizes = [3, 128], strides = [1, 1]} : vector<15x128xf32> to vector<3x128xf32>
    %c12 = arith.constant 12 : index
    %c0_10 = arith.constant 0 : index
    %22 = vector.load %arg2[%c12, %c0_10] : memref<33x128xf32, #tpu.memory_space<vmem>>, vector<3x128xf32>
    tpu.vector_store %arg2[%c12, %c0_10], %21 {strides = array<i32>} : memref<33x128xf32, #tpu.memory_space<vmem>>, vector<3x128xf32>,
    %23 = vector.extract_strided_slice %13 {offsets = [6, 0], sizes = [3, 128], strides = [1, 1]} : vector<15x128xf32> to vector<3x128xf32>
    %c15 = arith.constant 15 : index
    %c0_11 = arith.constant 0 : index
    %24 = vector.load %arg2[%c15, %c0_11] : memref<33x128xf32, #tpu.memory_space<vmem>>, vector<3x128xf32>
    tpu.vector_store %arg2[%c15, %c0_11], %23 {strides = array<i32>} : memref<33x128xf32, #tpu.memory_space<vmem>>, vector<3x128xf32>,
    %25 = vector.extract_strided_slice %14 {offsets = [6, 0], sizes = [3, 128], strides = [1, 1]} : vector<15x128xf32> to vector<3x128xf32>
    %c18 = arith.constant 18 : index
    %c0_12 = arith.constant 0 : index
    %26 = vector.load %arg2[%c18, %c0_12] : memref<33x128xf32, #tpu.memory_space<vmem>>, vector<3x128xf32>
    tpu.vector_store %arg2[%c18, %c0_12], %25 {strides = array<i32>} : memref<33x128xf32, #tpu.memory_space<vmem>>, vector<3x128xf32>,
    %27 = vector.extract_strided_slice %13 {offsets = [9, 0], sizes = [3, 128], strides = [1, 1]} : vector<15x128xf32> to vector<3x128xf32>
    %c21 = arith.constant 21 : index
    %c0_13 = arith.constant 0 : index
    %28 = vector.load %arg2[%c21, %c0_13] : memref<33x128xf32, #tpu.memory_space<vmem>>, vector<3x128xf32>
    tpu.vector_store %arg2[%c21, %c0_13], %27 {strides = array<i32>} : memref<33x128xf32, #tpu.memory_space<vmem>>, vector<3x128xf32>,
    %29 = vector.extract_strided_slice %14 {offsets = [9, 0], sizes = [3, 128], strides = [1, 1]} : vector<15x128xf32> to vector<3x128xf32>
    %c24 = arith.constant 24 : index
    %c0_14 = arith.constant 0 : index
    %30 = vector.load %arg2[%c24, %c0_14] : memref<33x128xf32, #tpu.memory_space<vmem>>, vector<3x128xf32>
    tpu.vector_store %arg2[%c24, %c0_14], %29 {strides = array<i32>} : memref<33x128xf32, #tpu.memory_space<vmem>>, vector<3x128xf32>,
    %31 = vector.extract_strided_slice %13 {offsets = [12, 0], sizes = [3, 128], strides = [1, 1]} : vector<15x128xf32> to vector<3x128xf32>
    %c27 = arith.constant 27 : index
    %c0_15 = arith.constant 0 : index
    %32 = vector.load %arg2[%c27, %c0_15] : memref<33x128xf32, #tpu.memory_space<vmem>>, vector<3x128xf32>
    tpu.vector_store %arg2[%c27, %c0_15], %31 {strides = array<i32>} : memref<33x128xf32, #tpu.memory_space<vmem>>, vector<3x128xf32>,
    %33 = vector.extract_strided_slice %14 {offsets = [12, 0], sizes = [3, 128], strides = [1, 1]} : vector<15x128xf32> to vector<3x128xf32>
    %c30 = arith.constant 30 : index
    %c0_16 = arith.constant 0 : index
    %34 = vector.load %arg2[%c30, %c0_16] : memref<33x128xf32, #tpu.memory_space<vmem>>, vector<3x128xf32>
    tpu.vector_store %arg2[%c30, %c0_16], %33 {strides = array<i32>} : memref<33x128xf32, #tpu.memory_space<vmem>>, vector<3x128xf32>,
    return
  }
  func.func @transform_0(%arg0: i32) -> (i32, i32) {
    %c0_i32 = arith.constant 0 : i32
    %c0_i32_0 = arith.constant 0 : i32
    return %c0_i32, %arg0 : i32, i32
  }
  func.func @transform_1(%arg0: i32) -> (i32, i32) {
    %c0_i32 = arith.constant 0 : i32
    %c0_i32_0 = arith.constant 0 : i32
    return %c0_i32, %arg0 : i32, i32
  }
}

</mosaic_0001>

<bundles_post_ra>
// kernel: tpu_custom_call.1
= control target key start
LH: loop header
LB: loop body
LE: loop exit
PB: predicated region body
PF: predicated region fallthrough
CT: control target
= control target key end

     0   :  { %6 = vsyncpa [#allocation3], 0  ;;  %s672_s0 = inlined_call_operand.hbm [shape: f32[3,128], index: 0, kind: input, shape index: {}]   ;;  %s673_s1 = inlined_call_operand.hbm [shape: f32[33,128], index: 1, kind: output, shape index: {}]  }
   0x1   :  { %7 = vsyncpa [#allocation4], 0  ;;  %s576_s6 = smov [#allocation2]  }
   0x2   :  { %s14_s7 = sshll.u32 %s576_s6, 4  ;;  %s15_s7 = int_to_ptr.vmem [resolvable:$true] %s14_s7 }
   0x3   :  { %s540_s8 = scalar_lea.vmem %s15_s7, 64  ;;  %p545_p1 = scmp.lt.s32.totalorder %s15_s7, %s15_s7 }
   0x4   :  { %p541_p0 = scmp.ne.s32.totalorder %s15_s7, %s540_s8  ;;  %p546_p2 = scmp.lt.s32.totalorder %s540_s8, %s540_s8 }
   0x6   :  { %p547_p3 = por %p546_p2, %p545_p1 }
   0x8   :  { %p548_p4 = pnand %p547_p3, %p541_p0 }
   0xa   :  { %551 = shalt.err (!%p548_p4)
}
   0xb   :  { %17 = dma.hbm_to_vmem [thread:$0]  %s672_s0, 64, %s15_s7, [#allocation3]  }
   0xc   :  { %572 = dma.done.wait [#allocation3], 64  }
   0xd   :  { %573 = vsyncadd [#allocation3], 4294967232  ;;  %v21_v0 = vld [vmem:[#allocation2] sm:$0x7]  ;;  %vm39_vm0 = vcmask 1042432   ;;  %vm41_vm1 = vcmask 1045504  }
   0xe   :  { %22 = vst [vmem:[#allocation5] sm:$0x7] %v21_v0  ;;  %v23_v1 = vmul.f32 4.75, %v21_v0  ;;  %v24_v2 = vmul.f32 8.5, %v21_v0  ;;  %v25_v3 = vmul.f32 12.25, %v21_v0  ;;  %v26_v4 = vmul.f32 16.0, %v21_v0 }
   0xf   :  { %vm43_vm2 = vcmask 1040384   ;;  %vm45_vm3 = vcmask 1043456   ;;  %v577_v35 = vmov 683565275   ;;  %v578_v37 = vmov 2475754826  }
  0x10   :  { %v28_v5 = vrot.slane %v23_v1, 5  ;;  %v31_v6 = vrot.slane %v24_v2, 2  ;;  %v34_v7 = vrot.slane %v25_v3, 7  ;;  %v37_v8 = vrot.slane %v26_v4, 4  ;;  %s583_s0 = smov [#allocation5]  }
  0x11   :  { %v579_v39 = vmov 2131351028   ;;  %v580_v41 = vmov 2102212464   ;;  %v581_v43 = vmov 920167782  }
  0x12   :  { %v40_v9 = vsel %vm39_vm0, %v21_v0, %v28_v5  ;;  %v44_v10 = vsel %vm43_vm2, %v31_v6, %v34_v7  ;;  %v582_v51 = vmov 1326507024   ;;  %s478_s11 = sshll.u32 %s583_s0, 4  ;;  %s479_s11 = int_to_ptr.vmem [resolvable:$true] %s478_s11 }
  0x13   :  { %v599_v11 = vsel %vm41_vm1, %v40_v9, %v31_v6  ;;  %v601_v12 = vsel %vm45_vm3, %v44_v10, %v37_v8  ;;  %s552_s12 = scalar_lea.vmem %s479_s11, 640  ;;  %p557_p6 = scmp.lt.s32.totalorder %s479_s11, %s479_s11 }
  0x14   :  { %v47_v13 = vand.u32 2147483647, %v599_v11  ;;  %v50_v14 = vand.u32 2139095040, %v599_v11  ;;  %v151_v15 = vand.u32 2147483647, %v601_v12  ;;  %v154_v16 = vand.u32 2139095040, %v601_v12  ;;  %p553_p5 = scmp.ne.s32.totalorder %s479_s11, %s552_s12  ;;  %p558_p7 = scmp.lt.s32.totalorder %s552_s12, %s552_s12 }
  0x15   :  { %vm49_vm2 = vcmp.lt.s32.totalorder %v599_v11, 0 }
  0x16   :  { %v51_v17 = vshrl.u32 %v50_v14, 23  ;;  %v54_v18 = vand.u32 8388607, %v47_v13  ;;  %v155_v19 = vshrl.u32 %v154_v16, 23  ;;  %v158_v20 = vand.u32 8388607, %v151_v15  ;;  %p559_p8 = por %p558_p7, %p557_p6 }
  0x17   :  { %vm48_vm3 = vcmp.le.f32.partialorder %v47_v13, 0.7853982 }
  0x18   :  { %v490_v21 = vadd.s32 4294967169, %v51_v17  ;;  %v494_v22 = vadd.s32 4294967169, %v155_v19  ;;  %v55_v24 = vor.u32 8388608, %v54_v18  ;;  %v159_v25 = vor.u32 8388608, %v158_v20  ;;  %p560_p9 = pnand %p559_p8, %p553_p5 }
  0x1a   :  { %v57_v23 = vadd.s32 1, %v490_v21  ;;  %v161_v26 = vadd.s32 1, %v494_v22  ;;  %v611_v31 = vshll.u32 %v55_v24, 8  ;;  %v613_v33 = vshll.u32 %v159_v25, 8 }
  0x1c   :  { %vm58_vm4 = vcmp.gt.s32.totalorder %v57_v23, 0  ;;  %vm162_vm5 = vcmp.gt.s32.totalorder %v161_v26, 0 }
  0x1d   :  { %v59_v27 = vsel %vm58_vm4, %v57_v23, 0  ;;  %v163_v30 = vsel %vm162_vm5, %v161_v26, 0  ;;  %vm153_vm4 = vcmp.lt.s32.totalorder %v601_v12, 0  ;;  %vm152_vm5 = vcmp.le.f32.partialorder %v151_v15, 0.7853982 }
  0x1e   :  { %v60_v28 = vshrl.u32 %v59_v27, 5  ;;  %v61_v29 = vand.u32 31, %v59_v27  ;;  %v165_v32 = vand.u32 31, %v163_v30  ;;  %v615_v45 = vshrl.u32 %v163_v30, 5 }
  0x20   :  { %v62_v34 = vsub.s32 32, %v61_v29  ;;  %v64_v36 = vshll.u32 %v577_v35, %v61_v29  ;;  %v67_v38 = vshll.u32 %v578_v37, %v61_v29  ;;  %v70_v40 = vshll.u32 %v579_v39, %v61_v29 }
  0x21   :  { %v73_v42 = vshll.u32 %v580_v41, %v61_v29  ;;  %v76_v44 = vshll.u32 %v581_v43, %v61_v29  ;;  %vm79_vm6 = vcmp.lt.s32.totalorder %v60_v28, 1  ;;  %vm80_vm7 = vcmp.lt.s32.totalorder %v60_v28, 2 }
  0x22   :  { %v63_v46 = vshrl.u32 %v577_v35, %v62_v34  ;;  %v65_v47 = vshrl.u32 %v578_v37, %v62_v34  ;;  %v68_v48 = vshrl.u32 %v579_v39, %v62_v34  ;;  %v71_v49 = vshrl.u32 %v580_v41, %v62_v34 }
  0x23   :  { %v74_v50 = vshrl.u32 %v581_v43, %v62_v34  ;;  %v77_v52 = vshrl.u32 %v582_v51, %v62_v34  ;;  %vm82_vm8 = vcmp.lt.s32.totalorder %v60_v28, 4  ;;  %v166_v56 = vsub.s32 32, %v165_v32 }
  0x24   :  { %v66_v53 = vor.u32 %v65_v47, %v64_v36  ;;  %v69_v54 = vor.u32 %v68_v48, %v67_v38  ;;  %v72_v55 = vor.u32 %v71_v49, %v70_v40  ;;  %vm81_vm9 = vcmp.lt.s32.totalorder %v60_v28, 3 }
  0x25   :  { %v75_v57 = vor.u32 %v74_v50, %v73_v42  ;;  %v78_v58 = vor.u32 %v77_v52, %v76_v44  ;;  %v168_v59 = vshll.u32 %v577_v35, %v165_v32  ;;  %v171_v3 = vshll.u32 %v578_v37, %v165_v32 }
  0x26   :  { %v83_v60 = vsel %vm79_vm6, %v63_v46, %v66_v53  ;;  %v84_v61 = vsel %vm82_vm8, %v72_v55, 2102212464  ;;  %v87_v62 = vsel %vm79_vm6, %v66_v53, %v69_v54  ;;  %v91_v63 = vsel %vm79_vm6, %v69_v54, %v72_v55 }
  0x27   :  { %v85_v0 = vsel %vm81_vm9, %v69_v54, %v84_v61  ;;  %v88_v1 = vsel %vm82_vm8, %v75_v57, 920167782  ;;  %v92_v2 = vsel %vm82_vm8, %v78_v58, 1326507024  ;;  %v167_v6 = vshrl.u32 %v577_v35, %v166_v56 }
  0x28   :  { %v89_v4 = vsel %vm81_vm9, %v72_v55, %v88_v1  ;;  %v93_v5 = vsel %vm81_vm9, %v75_v57, %v92_v2  ;;  %v169_v7 = vshrl.u32 %v578_v37, %v166_v56  ;;  %v86_v8 = vsel %vm80_vm7, %v83_v60, %v85_v0 }
  0x29   :  { %v90_v9 = vsel %vm80_vm7, %v87_v62, %v89_v4  ;;  %v94_v10 = vsel %vm80_vm7, %v91_v63, %v93_v5  ;;  %v172_v14 = vshrl.u32 %v579_v39, %v166_v56  ;;  %v174_v22 = vshll.u32 %v579_v39, %v165_v32 }
  0x2a   :  { %v624_v16 = vmul.u32.u64.low %v611_v31, %v94_v10  ;;  %v625_v17 = vmul.u32.u64.high %v611_v31, %v94_v10, %v624_v16  ;;  %v628_v18 = vmul.u32.u64.low %v611_v31, %v90_v9  ;;  %v629_v19 = vmul.u32.u64.high %v611_v31, %v90_v9, %v628_v18 }
  0x2b   :  { %v170_v20 = vor.u32 %v169_v7, %v168_v59  ;;  %v173_v21 = vor.u32 %v172_v14, %v171_v3  ;;  %v175_v23 = vshrl.u32 %v580_v41, %v166_v56  ;;  %v177_v24 = vshll.u32 %v580_v41, %v165_v32 }
  0x2c   :  { %v178_v25 = vshrl.u32 %v581_v43, %v166_v56  ;;  %v180_v26 = vshll.u32 %v581_v43, %v165_v32  ;;  %v181_v27 = vshrl.u32 %v582_v51, %v166_v56  ;;  %v102_v28 = vmul.u32 %v611_v31, %v86_v8 }
  0x2d   :  { %v176_v29 = vor.u32 %v175_v23, %v174_v22  ;;  %vm183_vm10 = vcmp.lt.s32.totalorder %v615_v45, 1  ;;  %vm184_vm11 = vcmp.lt.s32.totalorder %v615_v45, 2  ;;  %vm104_vm12 = vc.u32 %v625_v17, %v628_v18 }
  0x2e   :  { %v105_v30 = vadd.s32 1, %v629_v19  ;;  %v179_v34 = vor.u32 %v178_v25, %v177_v24  ;;  %vm185_vm13 = vcmp.lt.s32.totalorder %v615_v45, 3  ;;  %v182_v35 = vor.u32 %v181_v27, %v180_v26 }
  0x2f   :  { %vm186_vm14 = vcmp.lt.s32.totalorder %v615_v45, 4  ;;  %v187_v36 = vsel %vm183_vm10, %v167_v6, %v170_v20  ;;  %v191_v32 = vsel %vm183_vm10, %v170_v20, %v173_v21  ;;  %v195_v39 = vsel %vm183_vm10, %v173_v21, %v176_v29 }
  0x30   :  { %v106_v37 = vsel %vm104_vm12, %v105_v30, %v629_v19  ;;  %v188_v31 = vsel %vm186_vm14, %v176_v29, 2102212464  ;;  %v192_v38 = vsel %vm186_vm14, %v179_v34, 920167782  ;;  %v196_v43 = vsel %vm186_vm14, %v182_v35, 1326507024 }
  0x31   :  { %v107_v40 = vadd.s32 %v106_v37, %v102_v28  ;;  %v189_v41 = vsel %vm185_vm13, %v173_v21, %v188_v31  ;;  %v193_v42 = vsel %vm185_vm13, %v176_v29, %v192_v38  ;;  %v197_v47 = vsel %vm185_vm13, %v179_v34, %v196_v43 }
  0x32   :  { %v190_v44 = vsel %vm184_vm11, %v187_v36, %v189_v41  ;;  %v194_v46 = vsel %vm184_vm11, %v191_v32, %v193_v42  ;;  %v198_v49 = vsel %vm184_vm11, %v195_v39, %v197_v47  ;;  %v103_v4 = vadd.s32 %v628_v18, %v625_v17 }
  0x33   :  { %v108_v48 = vadd.s32 536870912, %v107_v40  ;;  %v646_v50 = vmul.u32.u64.low %v613_v33, %v194_v46  ;;  %v647_v51 = vmul.u32.u64.high %v613_v33, %v194_v46, %v646_v50  ;;  %v206_v55 = vmul.u32 %v613_v33, %v190_v44 }
  0x34   :  { %v650_v52 = vmul.u32.u64.low %v613_v33, %v198_v49  ;;  %v651_v53 = vmul.u32.u64.high %v613_v33, %v198_v49, %v650_v52  ;;  %vm139_vm12 = vweird.f32 %v599_v11 }
  0x35   :  { %v109_v54 = vshrl.u32 %v108_v48, 30  ;;  %v209_v57 = vadd.s32 1, %v647_v51 }
  0x36   :  { %vm208_vm15 = vc.u32 %v651_v53, %v646_v50  ;;  %v207_v24 = vadd.s32 %v646_v50, %v651_v53 }
  0x37   :  { %v110_v56 = vshll.u32 %v109_v54, 30  ;;  %v210_v45 = vsel %vm208_vm15, %v209_v57, %v647_v51  ;;  %v133_v29 = vsub.s32 4, %v109_v54 }
  0x38   :  { %v211_v59 = vadd.s32 %v210_v45, %v206_v55 }
  0x39   :  { %v111_v58 = vsub.s32 %v107_v40, %v110_v56  ;;  %v134_v31 = vsel %vm49_vm2, %v133_v29, %v109_v54 }
  0x3a   :  { %v212_v61 = vadd.s32 536870912, %v211_v59  ;;  %v136_v42 = vsel %vm48_vm3, 0, %v134_v31 }
  0x3b   :  { %v113_v60 = vsub.s32 0, %v111_v58  ;;  %v140_v46 = vadd.s32 3, %v136_v42  ;;  %v348_v51 = vand.u32 3, %v136_v42 }
  0x3c   :  { %v213_v63 = vshrl.u32 %v212_v61, 30 }
  0x3d   :  { %v491_v62 = vmin.u32 %v113_v60, %v111_v58  ;;  %v141_v50 = vand.u32 3, %v140_v46  ;;  %vm353_vm7 = vcmp.eq.s32.totalorder %v348_v51, 2  ;;  %vm350_vm9 = vcmp.eq.s32.totalorder %v348_v51, 0 }
  0x3e   :  { %v214_v1 = vshll.u32 %v213_v63, 30  ;;  %v237_v44 = vsub.s32 4, %v213_v63  ;;  %vm349_vm11 = vcmp.lt.s32.totalorder %v348_v51, 2 }
  0x3f   :  { %v115_v0 = vclz %v491_v62  ;;  %vm146_vm6 = vcmp.eq.s32.totalorder %v141_v50, 2  ;;  %vm143_vm8 = vcmp.eq.s32.totalorder %v141_v50, 0  ;;  %vm142_vm10 = vcmp.lt.s32.totalorder %v141_v50, 2 }
  0x40   :  { %v215_v3 = vsub.s32 %v211_v59, %v214_v1  ;;  %v238_v48 = vsel %vm153_vm4, %v237_v44, %v213_v63 }
  0x41   :  { %v492_v2 = vadd.s32 4294967294, %v115_v0  ;;  %v240_v52 = vsel %vm152_vm5, 0, %v238_v48 }
  0x42   :  { %v217_v5 = vsub.s32 0, %v215_v3  ;;  %v244_v56 = vadd.s32 3, %v240_v52  ;;  %v451_v63 = vand.u32 3, %v240_v52 }
  0x43   :  { %vm493_vm0 = vcmp.lt.s32.totalorder %v492_v2, 0 }
  0x44   :  { %v118_v33 = vsel %vm493_vm0, 0, %v492_v2  ;;  %v495_v9 = vmin.u32 %v217_v5, %v215_v3  ;;  %v245_v62 = vand.u32 3, %v244_v56  ;;  %vm456_vm14 = vcmp.eq.s32.totalorder %v451_v63, 2 }
  0x45   :  { %v119_v6 = vsub.s32 32, %v118_v33  ;;  %v120_v7 = vshll.u32 %v111_v58, %v118_v33  ;;  %v123_v8 = vsub.s32 4294967266, %v118_v33  ;;  %vm453_vm0 = vcmp.eq.s32.totalorder %v451_v63, 0 }
  0x46   :  { %v219_v16 = vclz %v495_v9  ;;  %vm250_vm13 = vcmp.eq.s32.totalorder %v245_v62, 2  ;;  %vm247_vm15 = vcmp.eq.s32.totalorder %v245_v62, 0 }
  0x47   :  { %v121_v10 = vshrl.u32 %v103_v4, %v119_v6  ;;  %v124_v14 = vadd.s32 127, %v123_v8 }
  0x48   :  { %v496_v21 = vadd.s32 4294967294, %v219_v16 }
  0x49   :  { %v122_v19 = vor.u32 %v121_v10, %v120_v7  ;;  %v125_v20 = vshll.u32 %v124_v14, 23 }
  0x4a   :  { %vm497_vm1 = vcmp.lt.s32.totalorder %v496_v21, 0 }
  0x4b   :  { %v126_v22 = vor.u32 4788187, %v125_v20  ;;  %v129_v23 = vcvt.s32.f32 %v122_v19  ;;  %v222_v17 = vsel %vm497_vm1, 0, %v496_v21  ;;  %vm246_vm1 = vcmp.lt.s32.totalorder %v245_v62, 2 }
  0x4c   :  { %v223_v18 = vsub.s32 32, %v222_v17  ;;  %v224_v26 = vshll.u32 %v215_v3, %v222_v17  ;;  %v227_v27 = vsub.s32 4294967266, %v222_v17 }
  0x4d   :  { %v127_v25 = vand.u32 2147483647, %v126_v22 }
  0x4e   :  { %v225_v30 = vshrl.u32 %v207_v24, %v223_v18  ;;  %v228_v34 = vadd.s32 127, %v227_v27 }
  0x4f   :  { %v130_v28 = vmul.f32 %v129_v23, %v127_v25 }
  0x50   :  { %v226_v36 = vor.u32 %v225_v30, %v224_v26  ;;  %v229_v32 = vshll.u32 %v228_v34, 23 }
  0x51   :  { %v131_v35 = vxor.u32 2147483648, %v130_v28 }
  0x52   :  { %v230_v39 = vor.u32 4788187, %v229_v32  ;;  %v233_v40 = vcvt.s32.f32 %v226_v36 }
  0x53   :  { %v132_v37 = vsel %vm49_vm2, %v131_v35, %v130_v28  ;;  %vm452_vm2 = vcmp.lt.s32.totalorder %v451_v63, 2 }
  0x54   :  { %v135_v38 = vsel %vm48_vm3, %v599_v11, %v132_v37  ;;  %v231_v41 = vand.u32 2147483647, %v230_v39  ;;  %vm243_vm3 = vweird.f32 %v601_v12 }
  0x55   :  { %524 = vcosq.f32 %v135_v38 }
  0x56   :  { %526 = vsinq.f32 %v135_v38  ;;  %v234_v43 = vmul.f32 %v233_v40, %v231_v41 }
  0x58   :  { %v235_v13 = vxor.u32 2147483648, %v234_v43 }
  0x5a   :  { %v236_v47 = vsel %vm153_vm4, %v235_v13, %v234_v43 }
  0x5b   :  { %v239_v49 = vsel %vm152_vm5, %v601_v12, %v236_v47 }
  0x5c   :  { %528 = vcosq.f32 %v239_v49 }
  0x5d   :  { %530 = vsinq.f32 %v239_v49 }
  0x62   :  { %v525_v53 = vpop.eup %524 }
  0x63   :  { %v527_v54 = vpop.eup %526  ;;  %v147_v55 = vxor.u32 2147483648, %v525_v53 }
  0x64   :  { %v144_v15 = vxor.u32 2147483648, %v527_v54 }
  0x65   :  { %v148_v57 = vsel %vm146_vm6, %v147_v55, %v527_v54  ;;  %v355_v58 = vsel %vm353_vm7, %v147_v55, %v527_v54 }
  0x66   :  { %v145_v45 = vsel %vm143_vm8, %v525_v53, %v144_v15  ;;  %v352_v59 = vsel %vm350_vm9, %v525_v53, %v144_v15 }
  0x67   :  { %v149_v60 = vsel %vm142_vm10, %v145_v45, %v148_v57  ;;  %v356_v61 = vsel %vm349_vm11, %v352_v59, %v355_v58 }
  0x68   :  { %v150_v0 = vsel %vm139_vm12, nan, %v149_v60  ;;  %v357_v1 = vsel %vm139_vm12, nan, %v356_v61 }
  0x69   :  { %461 = vst [vmem:[#allocation5 + $0x3] ss:$10 sps:$4 sm:$0xc7] %v150_v0   ;;  %463 = vst [vmem:[#allocation5 + $0x6] sm:$0x38] %v150_v0  ;;  %v529_v2 = vpop.eup %528 }
  0x6a   :  { %462 = vst [vmem:[#allocation5 + $0x6] ss:$10 sps:$4 sm:$0xc7] %v357_v1   ;;  %464 = vst [vmem:[#allocation5 + $0x9] sm:$0x38] %v357_v1  ;;  %v531_v3 = vpop.eup %530  ;;  %v251_v11 = vxor.u32 2147483648, %v529_v2 }
  0x6b   :  { %v248_v4 = vxor.u32 2147483648, %v531_v3 }
  0x6c   :  { %v252_v33 = vsel %vm250_vm13, %v251_v11, %v531_v3  ;;  %v458_v5 = vsel %vm456_vm14, %v251_v11, %v531_v3 }
  0x6d   :  { %v249_v6 = vsel %vm247_vm15, %v529_v2, %v248_v4  ;;  %v455_v7 = vsel %vm453_vm0, %v529_v2, %v248_v4 }
  0x6e   :  { %v253_v8 = vsel %vm246_vm1, %v249_v6, %v252_v33  ;;  %v459_v9 = vsel %vm452_vm2, %v455_v7, %v458_v5 }
  0x6f   :  { %v254_v10 = vsel %vm243_vm3, nan, %v253_v8  ;;  %v460_v14 = vsel %vm243_vm3, nan, %v459_v9 }
  0x70   :  { %466 = vst [vmem:[#allocation5 + $0x11] ss:$10 sps:$4 sm:$0x71] %v254_v10   ;;  %469 = vst [vmem:[#allocation5 + $0x14] sm:$0xe] %v254_v10 }
  0x71   :  { %468 = vst [vmem:[#allocation5 + $0x14] ss:$10 sps:$4 sm:$0x71] %v460_v14   ;;  %470 = vst [vmem:[#allocation5 + $0x17] sm:$0xe] %v460_v14 }
  0x72   :  { %563 = shalt.err (!%p560_p9)
}
  0x73   :  { %s584_s13 = smov 128   ;;  %s585_s14 = smov 8  }
  0x74   :  { %484 = dma.vmem_to_hbm [thread:$0]  %s479_s11, 640, %s673_s1, [#allocation4], %s584_s13, %s584_s13, %s585_s14  }
  0x75   :  { %574 = dma.done.wait [#allocation4], 640  }
  0x76   :  { %575 = vsyncadd [#allocation4], 4294966656 }
  0x77   :  { %488 = vsyncpa [#allocation3], 1 }
  0x78   :  { %489 = vsyncpa [#allocation4], 1 }

</bundles_post_ra>
